<compile_context>
chip_gen: v5e
topology: v5e:2x2
jax: 0.10.0
libtpu: 0.0.40
codegen_flags: <defaults>
</compile_context>

<pallas_src>
import functools

import jax
import jax.numpy as jnp
from jax.experimental import pallas as pl
from jax.experimental.pallas import tpu as pltpu


def _round_up(x, m):
    return ((x + m - 1) // m) * m


def _use_int8_mxu():
    """int8 MXU exists on v4/v5/v6; v7x (and unknown chips) -> bf16 path."""
    try:
        kind = jax.devices()[0].device_kind.lower()
    except Exception:
        return False
    return any(tag in kind for tag in ("v4", "v5", "v6"))


# --------------------------------------------------------------------------
# Pass 1: memory-bound per-row absmax int8 activation quantization.
# --------------------------------------------------------------------------
def _quantize_act_kernel(x_ref, xq_ref, inv_ref):
    """x_ref (tq, K_p) float -> xq_ref (tq, K_p) int8/bf16, inv_ref (tq, 1) f32."""
    x = x_ref[...].astype(jnp.float32)
    absmax = jnp.maximum(jnp.max(jnp.abs(x), axis=-1, keepdims=True), 1e-5)
    xq = jnp.clip(jnp.round(x * (127.0 / absmax)), -128.0, 127.0)
    xq_ref[...] = xq.astype(xq_ref.dtype)
    inv_ref[...] = absmax * (1.0 / 127.0)          # == 1/x_scale, no reciprocal


# --------------------------------------------------------------------------
# Pass 2: tiled matmul over quantized activations and frozen ternary weights.
# --------------------------------------------------------------------------
def _bitlinear_matmul_kernel(w_scale_ref, inv_ref, xq_ref, wq_ref, o_ref, *,
                             use_int_mxu):
    """One (M-tile, N-tile) output block, accumulated in-place over K steps.

    w_scale_ref : SMEM (1,)      f32       frozen per-tensor weight scale
    inv_ref     : VMEM (tm, 1)   f32       per-row dequant factor absmax/127
    xq_ref      : VMEM (tm, tk)  int8/bf16 quantized activation block
    wq_ref      : VMEM (tk, tn)  int8      frozen ternary weight block of [K, N]
    o_ref       : VMEM (tm, tn)  f32       output block (resident across K)
    """
    k = pl.program_id(2)

    @pl.when(k == 0)
    def _():
        o_ref[...] = jnp.zeros_like(o_ref)

    if use_int_mxu:
        # Native int8 MXU (v4/v5/v6): no per-step int8->bf16 unpack.
        part = jnp.dot(xq_ref[...], wq_ref[...],
                       preferred_element_type=jnp.int32)
        o_ref[...] += part.astype(jnp.float32)     # exact: |sum| < 2^24
    else:
        # v7x: bf16 x bf16 -> f32 (exact for ints in [-128,127] and {-1,0,+1}).
        part = jnp.dot(xq_ref[...], wq_ref[...].astype(jnp.bfloat16),
                       preferred_element_type=jnp.float32)
        o_ref[...] += part

    @pl.when(k == pl.num_programs(2) - 1)
    def _():
        # Dequantize the lane-dense output block in place on the last K step.
        o_ref[...] = o_ref[...] * (w_scale_ref[0] * inv_ref[...])


# --------------------------------------------------------------------------
# Offline ("frozen") weight preparation + forward wrapper.
# --------------------------------------------------------------------------
def prepare_frozen_weights(w, *, tn=512, tk=1024):
    """Offline BitNet b1.58 weight quantization in the kernel's layout.

    w: [N, K] float.  Returns (w_q_pad int8 [K_p, N_p], w_scale f32, N).
    w_scale = mean(|W|); W_q = clip(round(W / w_scale), -1, 1) (ternary).
    The ternary weight is transposed to [K, N] and zero-padded to the kernel's
    tile boundaries so the forward pass does no per-call weight work.
    """
    N, K = w.shape
    w_scale = jnp.maximum(jnp.mean(jnp.abs(w)), 1e-5).astype(jnp.float32)
    w_q = jnp.clip(jnp.round(w / w_scale), -1.0, 1.0).T.astype(jnp.int8)  # [K, N]
    tk_eff = min(tk, _round_up(K, 128))
    tn_eff = min(tn, _round_up(N, 128))
    K_p = _round_up(K, tk_eff)
    N_p = _round_up(N, tn_eff)
    w_q_pad = jnp.pad(w_q, ((0, K_p - K), (0, N_p - N)))
    return w_q_pad, w_scale, N


def freeze_bitlinear(x, w_q_pad, w_scale, n_out, *, tm=256, tn=512, tk=1024):
    """Frozen BitLinear forward: y = dequant(absmax_int8(x) @ W_ternary).

    x        : [..., K] float (f32 or bf16) activations.
    w_q_pad  : [K_p, N_p] int8 frozen ternary weights from
               prepare_frozen_weights (pre-transposed + tile-padded offline).
    w_scale  : scalar f32 frozen per-tensor weight scale (mean |W|).
    n_out    : logical output feature count N (<= N_p).
    returns  : [..., n_out] f32.
    """
    *lead, K = x.shape
    M = 1
    for d in lead:
        M *= d
    K_p, N_p = w_q_pad.shape
    assert K <= K_p, "weight K padding smaller than activation K"

    use_int_mxu = _use_int8_mxu()
    xq_dtype = jnp.int8 if use_int_mxu else jnp.bfloat16
    xq_isz = jnp.dtype(xq_dtype).itemsize

    # Tile sizes: keep int8-friendly 32-row granularity on M, 128 lanes on N/K.
    tm = min(tm, _round_up(M, 32))
    tn = min(tn, N_p)
    tk = min(tk, K_p)
    assert N_p % tn == 0 and K_p % tk == 0, "weight padding must match tiles"
    M_p = _round_up(M, tm)

    x2d = x.reshape(M, K)
    if M_p != M or K_p != K:
        # No-op at tile-aligned shapes; zero K-pad columns are inert in both
        # the absmax and the matmul.
        x2d = jnp.pad(x2d, ((0, M_p - M), (0, K_p - K)))

    w_scale_arr = jnp.asarray(w_scale, jnp.float32).reshape(1)

    # ---- pass 1: quantize activations once, write int8/bf16 + scales to HBM.
    x_isz = jnp.dtype(x2d.dtype).itemsize
    tq = tm
    # Shrink the quantization M-tile until the double-buffered (tq, K_p)
    # in/out blocks fit comfortably (<= ~8 MiB) and tq divides M_p.
    while tq > 32 and (2 * tq * K_p * (x_isz + xq_isz) > (8 << 20) or M_p % tq):
        tq -= 32

    xq, inv = pl.pallas_call(
        _quantize_act_kernel,
        out_shape=(jax.ShapeDtypeStruct((M_p, K_p), xq_dtype),
                   jax.ShapeDtypeStruct((M_p, 1), jnp.float32)),
        grid=(M_p // tq,),
        in_specs=[pl.BlockSpec((tq, K_p), lambda i: (i, 0))],
        out_specs=(pl.BlockSpec((tq, K_p), lambda i: (i, 0)),
                   pl.BlockSpec((tq, 1), lambda i: (i, 0))),
        compiler_params=pltpu.CompilerParams(
            dimension_semantics=("parallel",)),
    )(x2d)

    # ---- pass 2: tiled matmul + dequant, accumulating in the output block.
    grid = (M_p // tm, N_p // tn, K_p // tk)

    cost = pl.CostEstimate(
        flops=2 * M_p * N_p * K_p,
        transcendentals=0,
        bytes_accessed=(M_p * K_p * xq_isz * (N_p // tn)   # xq re-stream per j
                        + K_p * N_p * 1 * (M_p // tm)      # weight re-stream
                        + M_p * N_p * 4                    # output
                        + M_p * 4 * (N_p // tn)),          # inv scales
    )

    vmem_need = 2 * (tm * tk * xq_isz + tk * tn + tm * tn * 4 + tm * 4)
    vmem_limit = int(min(max(2 * vmem_need, 16 << 20), 48 << 20))

    out2d = pl.pallas_call(
        functools.partial(_bitlinear_matmul_kernel, use_int_mxu=use_int_mxu),
        out_shape=jax.ShapeDtypeStruct((M_p, N_p), jnp.float32),
        grid=grid,
        in_specs=[
            pl.BlockSpec(memory_space=pltpu.MemorySpace.SMEM),       # w_scale
            pl.BlockSpec((tm, 1), lambda i, j, k: (i, 0)),           # inv
            pl.BlockSpec((tm, tk), lambda i, j, k: (i, k)),          # xq
            pl.BlockSpec((tk, tn), lambda i, j, k: (k, j)),          # weights
        ],
        out_specs=pl.BlockSpec((tm, tn), lambda i, j, k: (i, j)),
        compiler_params=pltpu.CompilerParams(
            dimension_semantics=("parallel", "parallel", "arbitrary"),
            vmem_limit_bytes=vmem_limit),
        cost_estimate=cost,
    )(w_scale_arr, inv, xq, w_q_pad)

    return out2d[:M, :n_out].reshape(*lead, n_out)


def reference_forward(x, w_q_pad, w_scale, n_out):
    """Pure-JAX reference of the same math, for a sanity check."""
    x = x.astype(jnp.float32)
    K = x.shape[-1]
    absmax = jnp.maximum(jnp.max(jnp.abs(x), axis=-1, keepdims=True), 1e-5)
    x_q = jnp.clip(jnp.round(x * (127.0 / absmax)), -128.0, 127.0)
    w = w_q_pad[:K, :n_out].astype(jnp.float32)
    acc = jnp.einsum("...k,kn->...n", x_q, w)
    return acc * (w_scale * absmax * (1.0 / 127.0))


if __name__ == "__main__":
    key = jax.random.PRNGKey(0)
    k_x, k_w = jax.random.split(key)

    batch, seq, in_features, out_features = 2, 8, 32, 64

    x = jax.random.normal(k_x, (batch, seq, in_features), dtype=jnp.float32)
    w = jax.random.normal(k_w, (out_features, in_features),
                          dtype=jnp.float32) * 0.05

    # Deterministic, in-script "frozen" quantized parameters (offline layout).
    w_q_pad, w_scale, n_out = prepare_frozen_weights(w)

    out = freeze_bitlinear(x, w_q_pad, w_scale, n_out)
    out = jax.block_until_ready(out)

    ref = reference_forward(x, w_q_pad, w_scale, n_out)
    assert out.shape == (batch, seq, out_features)
    assert jnp.allclose(out, ref, atol=1e-4, rtol=1e-4), "mismatch vs reference"

    print("KERNEL_OK")
</pallas_src>

<mosaic_0001>
module attributes {stable_mosaic.version = 11 : i64} {
  func.func @_quantize_act_kernel(%arg0: i32, %arg1: memref<32x128xf32, #tpu.memory_space<vmem>>, %arg2: memref<32x128xbf16, #tpu.memory_space<vmem>>, %arg3: memref<32x1xf32, #tpu.memory_space<vmem>>) attributes {dimension_semantics = [#tpu.dimension_semantics<parallel>], iteration_bounds = array<i64: 1>, scalar_prefetch = 0 : i64, scratch_operands = 0 : i64, tpu.core_type = #tpu.core_type<tc>, window_params = [{transform_indices = @transform_0, window_bounds = array<i64: 32, 128>}, {transform_indices = @transform_1, window_bounds = array<i64: 32, 128>}, {transform_indices = @transform_2, window_bounds = array<i64: 32, 1>}]} {
    %c0 = arith.constant 0 : index
    %c0_0 = arith.constant 0 : index
    %0 = vector.load %arg1[%c0, %c0_0] : memref<32x128xf32, #tpu.memory_space<vmem>>, vector<32x128xf32>
    %1 = math.absf %0 : vector<32x128xf32>
    %cst = arith.constant dense<0xFF800000> : vector<32xf32>
    %2 = vector.multi_reduction <maximumf>, %1, %cst [1] : vector<32x128xf32> to vector<32xf32>
    %3 = vector.shape_cast %2 : vector<32xf32> to vector<32x1xf32>
    %cst_1 = arith.constant 9.99999974E-6 : f32
    %4 = vector.broadcast %cst_1 : f32 to vector<32x1xf32>
    %5 = arith.maximumf %3, %4 : vector<32x1xf32>
    %cst_2 = arith.constant 1.270000e+02 : f32
    %6 = vector.broadcast %cst_2 : f32 to vector<32x1xf32>
    %7 = arith.divf %6, %5 : vector<32x1xf32>
    %8 = vector.broadcast %7 : vector<32x1xf32> to vector<32x128xf32>
    %9 = arith.mulf %0, %8 : vector<32x128xf32>
    %10 = math.roundeven %9 : vector<32x128xf32>
    %cst_3 = arith.constant -1.280000e+02 : f32
    %cst_4 = arith.constant 1.270000e+02 : f32
    %11 = vector.broadcast %cst_3 : f32 to vector<32x128xf32>
    %12 = arith.maximumf %11, %10 : vector<32x128xf32>
    %13 = vector.broadcast %cst_4 : f32 to vector<32x128xf32>
    %14 = arith.minimumf %13, %12 : vector<32x128xf32>
    %15 = arith.truncf %14 : vector<32x128xf32> to vector<32x128xbf16>
    %c0_5 = arith.constant 0 : index
    %c0_6 = arith.constant 0 : index
    %16 = vector.load %arg2[%c0_5, %c0_6] : memref<32x128xbf16, #tpu.memory_space<vmem>>, vector<32x128xbf16>
    tpu.vector_store %arg2[%c0_5, %c0_6], %15 {strides = array<i32>} : memref<32x128xbf16, #tpu.memory_space<vmem>>, vector<32x128xbf16>,
    %cst_7 = arith.constant 0.00787401571 : f32
    %17 = vector.broadcast %cst_7 : f32 to vector<32x1xf32>
    %18 = arith.mulf %5, %17 : vector<32x1xf32>
    %c0_8 = arith.constant 0 : index
    %c0_9 = arith.constant 0 : index
    %19 = vector.load %arg3[%c0_8, %c0_9] : memref<32x1xf32, #tpu.memory_space<vmem>>, vector<32x1xf32>
    tpu.vector_store %arg3[%c0_8, %c0_9], %18 {strides = array<i32>} : memref<32x1xf32, #tpu.memory_space<vmem>>, vector<32x1xf32>,
    return
  }
  func.func @transform_0(%arg0: i32) -> (i32, i32) {
    %c0_i32 = arith.constant 0 : i32
    %c0_i32_0 = arith.constant 0 : i32
    return %arg0, %c0_i32 : i32, i32
  }
  func.func @transform_1(%arg0: i32) -> (i32, i32) {
    %c0_i32 = arith.constant 0 : i32
    %c0_i32_0 = arith.constant 0 : i32
    return %arg0, %c0_i32 : i32, i32
  }
  func.func @transform_2(%arg0: i32) -> (i32, i32) {
    %c0_i32 = arith.constant 0 : i32
    %c0_i32_0 = arith.constant 0 : i32
    return %arg0, %c0_i32 : i32, i32
  }
}

</mosaic_0001>

<bundles_post_ra>
// kernel: tpu_custom_call.1
= control target key start
LH: loop header
LB: loop body
LE: loop exit
PB: predicated region body
PF: predicated region fallthrough
CT: control target
= control target key end

     0   :  { %8 = vsyncpa [#allocation3], 0  ;;  %s345_s0 = inlined_call_operand.hbm [shape: f32[32,128], index: 0, kind: input, shape index: {}]   ;;  %s346_s1 = inlined_call_operand.hbm [shape: bf16[32,128], index: 1, kind: output, shape index: {0}]   ;;  %s347_s2 = inlined_call_operand.vmem [shape: f32[32,1], index: 2, kind: output, shape index: {1}]  }
   0x1   :  { %9 = vsyncpa [#allocation4], 0  ;;  %s14_s11 = sshll.u32 %s345_s0, 4  ;;  %s272_s12 = smov [#allocation2]   ;;  %s15_s11 = int_to_ptr.hbm [resolvable:$true] %s14_s11 }
   0x2   :  { %s16_s13 = sshll.u32 %s272_s12, 4  ;;  %s273_s14 = smov 128   ;;  %s17_s13 = int_to_ptr.vmem [resolvable:$true] %s16_s13 }
   0x3   :  { %s274_s15 = smov 8  }
   0x4   :  { %22 = dma.hbm_to_vmem [thread:$0]  %s15_s11, 512, %s17_s13, [#allocation3], %s273_s14, %s273_s14, %s274_s15  }
   0x5   :  { %268 = dma.done.wait [#allocation3], 512  }
   0x6   :  { %269 = vsyncadd [#allocation3], 4294966784  ;;  %v296_v0 = vld [vmem:[#allocation2 + $0x10] sm:$0xff]  ;;  %v298_v1 = vld [vmem:[#allocation2] sm:$0xff]  ;;  %vm135_vm0 = vcmask 7168   ;;  %s146_s26 = sshll.u32 %s346_s1, 4  ;;  %s147_s26 = int_to_ptr.hbm [resolvable:$true] %s146_s26 }
   0x7   :  { %v33_v2 = vand.u32 2147483647, %v296_v0  ;;  %v31_v3 = vand.u32 2147483647, %v298_v1  ;;  %v302_v4 = vld [vmem:[#allocation2 + $0x18] sm:$0xff]  ;;  %v304_v5 = vld [vmem:[#allocation2 + $0x8] sm:$0xff] }
   0x8   :  { %v34_v6 = vand.u32 2147483647, %v302_v4  ;;  %v32_v7 = vand.u32 2147483647, %v304_v5  ;;  %s276_s27 = smov 64   ;;  %s277_s28 = smov 4  }
   0x9   :  { %39 = vmax.xlane.f32.xlu1 %v33_v2  ;;  %35 = vmax.xlane.f32.xlu0 %v31_v3 }
  0x11   :  { %41 = vmax.xlane.f32.xlu1 %v34_v6  ;;  %37 = vmax.xlane.f32.xlu0 %v32_v7 }
  0x7c   :  { %v40_v8 = vpop.xlane.xlu1 %39  ;;  %v36_v9 = vpop.xlane.xlu0 %35 }
  0x7d   :  { %v45_v10 = vmax.f32 %v40_v8, 1e-05  ;;  %v43_v11 = vmax.f32 %v36_v9, 1e-05 }
  0x7f   :  { %212 = vrcp.f32 %v45_v10  ;;  %v133_v12 = vmul.f32 0.007874016, %v45_v10  ;;  %v131_v13 = vmul.f32 0.007874016, %v43_v11  ;;  %v88_v24 = vand.u32 2147483648, %v45_v10 }
  0x80   :  { %214 = vrcp.f32 %v43_v11  ;;  %v86_v27 = vand.u32 2147483647, %v45_v10  ;;  %v58_v28 = vand.u32 2147483648, %v43_v11  ;;  %v56_v30 = vand.u32 2147483647, %v43_v11 }
  0x81   :  { %138 = vst.msk [vmem:[%s347_s2 + $0x10] sm:$0xff] %vm135_vm0, %v133_v12  ;;  %vm82_vm3 = vweird.f32 %v45_v10  ;;  %v89_v34 = vor.u32 1.1754944e-38, %v88_v24  ;;  %vm52_vm5 = vweird.f32 %v43_v11 }
  0x82   :  { %136 = vst.msk [vmem:[%s347_s2] sm:$0xff] %vm135_vm0, %v131_v13  ;;  %vm87_vm6 = vcmp.eq.f32.partialorder %v86_v27, 8.507059e+37  ;;  %v59_v37 = vor.u32 1.1754944e-38, %v58_v28  ;;  %vm57_vm8 = vcmp.eq.f32.partialorder %v56_v30, 8.507059e+37 }
  0x84   :  { %v42_v14 = vpop.xlane.xlu1 %41  ;;  %v38_v15 = vpop.xlane.xlu0 %37 }
  0x85   :  { %v213_v16 = vpop.eup %212  ;;  %v46_v17 = vmax.f32 %v42_v14, 1e-05  ;;  %v316_v18 = vmax.f32 %v38_v15, 1e-05 }
  0x86   :  { %v215_v19 = vpop.eup %214  ;;  %v78_v20 = vmul.f32 %v213_v16, %v45_v10  ;;  %vm83_vm1 = vweird.f32 %v213_v16 }
  0x87   :  { %v48_v21 = vmul.f32 %v215_v19, %v43_v11  ;;  %216 = vrcp.f32 %v46_v17  ;;  %v134_v23 = vmul.f32 0.007874016, %v46_v17  ;;  %vm53_vm2 = vweird.f32 %v215_v19  ;;  %vm84_vm4 = vmor %vm82_vm3, %vm83_vm1 }
  0x88   :  { %v79_v22 = vsub.f32 1.0, %v78_v20  ;;  %218 = vrcp.f32 %v316_v18  ;;  %v132_v31 = vmul.f32 0.007874016, %v316_v18  ;;  %vm54_vm7 = vmor %vm52_vm5, %vm53_vm2  ;;  %v101_v47 = vand.u32 2147483647, %v46_v17 }
  0x89   :  { %v49_v25 = vsub.f32 1.0, %v48_v21  ;;  %139 = vst.msk [vmem:[%s347_s2 + $0x18] sm:$0xff] %vm135_vm0, %v134_v23  ;;  %v103_v48 = vand.u32 2147483648, %v46_v17  ;;  %vm97_vm10 = vweird.f32 %v46_v17  ;;  %v71_v53 = vand.u32 2147483647, %v316_v18 }
  0x8a   :  { %v80_v26 = vmul.f32 %v213_v16, %v79_v22  ;;  %137 = vst.msk [vmem:[%s347_s2 + $0x8] sm:$0xff] %vm135_vm0, %v132_v31  ;;  %v73_v54 = vand.u32 2147483648, %v316_v18  ;;  %vm67_vm13 = vweird.f32 %v316_v18  ;;  %vm102_vm14 = vcmp.eq.f32.partialorder %v101_v47, 8.507059e+37  ;;  %s275_s2 = smov [#allocation5]  }
  0x8b   :  { %v50_v29 = vmul.f32 %v215_v19, %v49_v25  ;;  %v104_v58 = vor.u32 1.1754944e-38, %v103_v48  ;;  %vm72_vm0 = vcmp.eq.f32.partialorder %v71_v53, 8.507059e+37  ;;  %s144_s23 = sshll.u32 %s275_s2, 4  ;;  %s145_s23 = int_to_ptr.vmem [resolvable:$true] %s144_s23 }
  0x8c   :  { %v81_v32 = vadd.f32 %v213_v16, %v80_v26 }
  0x8d   :  { %v217_v33 = vpop.eup %216  ;;  %v51_v35 = vadd.f32 %v215_v19, %v50_v29 }
  0x8e   :  { %v85_v36 = vsel %vm84_vm4, %v213_v16, %v81_v32  ;;  %v93_v38 = vmul.f32 %v217_v33, %v46_v17  ;;  %v219_v39 = vpop.eup %218  ;;  %vm98_vm9 = vweird.f32 %v217_v33 }
  0x8f   :  { %v90_v40 = vsel %vm87_vm6, %v89_v34, %v85_v36  ;;  %v55_v41 = vsel %vm54_vm7, %v215_v19, %v51_v35  ;;  %v63_v45 = vmul.f32 %v219_v39, %v316_v18  ;;  %vm68_vm11 = vweird.f32 %v219_v39  ;;  %vm99_vm12 = vmor %vm97_vm10, %vm98_vm9 }
  0x90   :  { %v91_v42 = vmul.f32 127.0, %v90_v40  ;;  %v60_v43 = vsel %vm57_vm8, %v59_v37, %v55_v41  ;;  %v94_v44 = vsub.f32 1.0, %v93_v38  ;;  %vm69_vm15 = vmor %vm67_vm13, %vm68_vm11 }
  0x91   :  { %v61_v46 = vmul.f32 127.0, %v60_v43  ;;  %v64_v51 = vsub.f32 1.0, %v63_v45 }
  0x92   :  { %v109_v49 = vmul.f32 %v91_v42, %v296_v0  ;;  %v95_v50 = vmul.f32 %v217_v33, %v94_v44  ;;  %v74_v0 = vor.u32 1.1754944e-38, %v73_v54 }
  0x93   :  { %v107_v52 = vmul.f32 %v61_v46, %v298_v1  ;;  %v65_v56 = vmul.f32 %v219_v39, %v64_v51 }
  0x94   :  { %v96_v55 = vadd.f32 %v217_v33, %v95_v50  ;;  %v192_v57 = vcvt.f32.s32 %v109_v49  ;;  %v190_v11 = vand.u32 2147483647, %v109_v49  ;;  %v195_v12 = vand.u32 2147483648, %v109_v49 }
  0x95   :  { %v176_v59 = vcvt.f32.s32 %v107_v52  ;;  %v66_v61 = vadd.f32 %v219_v39, %v65_v56  ;;  %v174_v14 = vand.u32 2147483647, %v107_v52  ;;  %v179_v15 = vand.u32 2147483648, %v107_v52 }
  0x96   :  { %v100_v60 = vsel %vm99_vm12, %v217_v33, %v96_v55  ;;  %v193_v62 = vcvt.s32.f32 %v192_v57  ;;  %vm191_vm2 = vcmp.lt.f32.partialorder %v190_v11, 8388608.0 }
  0x97   :  { %v105_v63 = vsel %vm102_vm14, %v104_v58, %v100_v60  ;;  %v177_v1 = vcvt.s32.f32 %v176_v59  ;;  %v70_v3 = vsel %vm69_vm15, %v219_v39, %v66_v61  ;;  %vm336_vm1 = vcmp.lt.f32.partialorder %v174_v14, 8388608.0 }
  0x98   :  { %v106_v2 = vmul.f32 127.0, %v105_v63  ;;  %v75_v6 = vsel %vm72_vm0, %v74_v0, %v70_v3  ;;  %v194_v7 = vand.u32 2147483647, %v193_v62 }
  0x99   :  { %v76_v9 = vmul.f32 127.0, %v75_v6  ;;  %v178_v10 = vand.u32 2147483647, %v177_v1 }
  0x9a   :  { %v110_v8 = vmul.f32 %v106_v2, %v302_v4  ;;  %v196_v17 = vor.u32 %v195_v12, %v194_v7 }
  0x9b   :  { %v108_v13 = vmul.f32 %v76_v9, %v304_v5  ;;  %v180_v18 = vor.u32 %v179_v15, %v178_v10 }
  0x9c   :  { %v200_v16 = vcvt.f32.s32 %v110_v8  ;;  %v198_v4 = vand.u32 2147483647, %v110_v8  ;;  %v197_v24 = vsel %vm191_vm2, %v196_v17, %v109_v49  ;;  %v203_v26 = vand.u32 2147483648, %v110_v8 }
  0x9d   :  { %v184_v19 = vcvt.f32.s32 %v108_v13  ;;  %v182_v23 = vand.u32 2147483647, %v108_v13  ;;  %v181_v5 = vsel %vm336_vm1, %v180_v18, %v107_v52  ;;  %v187_v28 = vand.u32 2147483648, %v108_v13 }
  0x9e   :  { %v201_v20 = vcvt.s32.f32 %v200_v16  ;;  %vm199_vm3 = vcmp.lt.f32.partialorder %v198_v4, 8388608.0  ;;  %v117_v31 = vmax.f32 %v197_v24, -128.0  ;;  %v115_v33 = vmax.f32 %v181_v5, -128.0 }
  0x9f   :  { %v185_v22 = vcvt.s32.f32 %v184_v19  ;;  %vm183_vm4 = vcmp.lt.f32.partialorder %v182_v23, 8388608.0 }
  0xa0   :  { %v202_v25 = vand.u32 2147483647, %v201_v20  ;;  %v121_v37 = vmin.f32 %v117_v31, 127.0  ;;  %v119_v39 = vmin.f32 %v115_v33, 127.0 }
  0xa1   :  { %v186_v27 = vand.u32 2147483647, %v185_v22 }
  0xa2   :  { %v204_v29 = vor.u32 %v203_v26, %v202_v25 }
  0xa3   :  { %v188_v30 = vor.u32 %v187_v28, %v186_v27 }
  0xa4   :  { %v205_v32 = vsel %vm199_vm3, %v204_v29, %v110_v8 }
  0xa5   :  { %v189_v34 = vsel %vm183_vm4, %v188_v30, %v108_v13  ;;  %v118_v35 = vmax.f32 %v205_v32, -128.0 }
  0xa6   :  { %v116_v36 = vmax.f32 %v189_v34, -128.0 }
  0xa7   :  { %v122_v38 = vmin.f32 %v118_v35, 127.0 }
  0xa8   :  { %v120_v40 = vmin.f32 %v116_v36, 127.0 }
  0xa9   :  { %v171_v41 = vpack.c.bf16 %v122_v38, %v121_v37 }
  0xaa   :  { %v166_v42 = vpack.c.bf16 %v120_v40, %v119_v39 }
  0xab   :  { %173 = vst [vmem:[#allocation5 + $0x8] sm:$0xff] %v171_v41  }
  0xac   :  { %167 = vst [vmem:[#allocation5] sm:$0xff] %v166_v42  }
  0xad   :  { %152 = dma.vmem_to_hbm [thread:$0]  %s145_s23, 256, %s147_s26, [#allocation4], %s276_s27, %s276_s27, %s277_s28  }
  0xae   :  { %270 = dma.done.wait [#allocation4], 256  }
  0xaf   :  { %271 = vsyncadd [#allocation4], 4294967040 }
  0xb0   :  { %161 = vsyncpa [#allocation3], 1 }
  0xb1   :  { %162 = vsyncpa [#allocation4], 1 }

</bundles_post_ra>
